<compile_context>
chip_gen: v5e
topology: v5e:2x2
jax: 0.10.0
libtpu: 0.0.40
codegen_flags: <defaults>
</compile_context>

<pallas_src>
import jax
import jax.numpy as jnp
from jax.experimental import pallas as pl
from jax.experimental.pallas import tpu as pltpu  # noqa: F401  (TPU backend)


def _rnn_forward_kernel(x_ref, h0_ref, w_ih_t_ref, w_hh_t_ref, b_ih_ref,
                        b_hh_ref, w_lin_t_ref, b_lin_ref,
                        logp_ref, hn_ref):
    """Fused: RNN(tanh) recurrence over time + Linear head + LogSoftmax."""
    seq_len = x_ref.shape[0]          # compile-time constant
    mm_dtype = w_hh_t_ref.dtype       # matmul input dtype (f32 or bf16)

    # Input projection for ALL timesteps in one MXU matmul: (S, I) @ (I, H).
    # Result (S, H) f32 stays in vregs -- no VMEM scratch round-trip.
    xw = (jnp.dot(x_ref[...], w_ih_t_ref[...],
                  preferred_element_type=jnp.float32)
          + b_ih_ref[...])

    w_hh_t = w_hh_t_ref[...]          # (H, H), resident across the unrolled loop
    b_hh = b_hh_ref[...]              # (1, H) f32

    # h_t = tanh(x_t W_ih^T + b_ih + h_{t-1} W_hh^T + b_hh), carried in f32.
    h = h0_ref[...]                   # (1, H) f32
    for t in range(seq_len):          # statically unrolled recurrence
        pre = (xw[t:t + 1, :]         # static row extract
               + jnp.dot(h.astype(mm_dtype), w_hh_t,
                         preferred_element_type=jnp.float32)
               + b_hh)
        h = jnp.tanh(pre)

    hn_ref[...] = h

    # Linear head on the last timestep: (1, H) @ (H, O) + b.
    logits = (jnp.dot(h.astype(mm_dtype), w_lin_t_ref[...],
                      preferred_element_type=jnp.float32)
              + b_lin_ref[...])

    # Numerically stable LogSoftmax over the last dim.
    m = jnp.max(logits, axis=-1, keepdims=True)
    shifted = logits - m
    lse = jnp.log(jnp.sum(jnp.exp(shifted), axis=-1, keepdims=True))
    logp_ref[...] = shifted - lse


def prepare_params(params, matmul_dtype=jnp.float32):
    """One-time layout prep (hoisted out of the per-call path).

    Pre-transposes weights to (in, out) so the kernel does plain `x @ W`,
    reshapes biases to (1, features), and optionally casts the matmul
    operands to bf16 (accumulation stays f32 inside the kernel).
    """
    hidden_size = params["w_ih"].shape[0]
    output_size = params["w_lin"].shape[0]
    return {
        "w_ih_t": jnp.asarray(params["w_ih"].T, matmul_dtype),    # (I, H)
        "w_hh_t": jnp.asarray(params["w_hh"].T, matmul_dtype),    # (H, H)
        "w_lin_t": jnp.asarray(params["w_lin"].T, matmul_dtype),  # (H, O)
        "b_ih": params["b_ih"].reshape(1, hidden_size).astype(jnp.float32),
        "b_hh": params["b_hh"].reshape(1, hidden_size).astype(jnp.float32),
        "b_lin": params["b_lin"].reshape(1, output_size).astype(jnp.float32),
    }


def rnn_forward(x, hidden, prepared):
    """Equivalent of RNN.forward(input, hidden) for num_layers == 1.

    x:        (seq_len, input_size) float32
    hidden:   (num_layers=1, 1, hidden_size) float32
    prepared: output of prepare_params(...)
    returns   (log_probs (1, output_size), hn (1, 1, hidden_size))
    """
    # TODO(synk): num_layers > 1 stacking not implemented (module default is 1).
    assert hidden.shape[0] == 1, "only num_layers == 1 is supported"

    hidden_size = prepared["w_hh_t"].shape[0]
    output_size = prepared["w_lin_t"].shape[1]
    mm_dtype = prepared["w_ih_t"].dtype

    h0 = hidden[0].astype(jnp.float32)  # (1, hidden_size)

    log_probs, hn = pl.pallas_call(
        _rnn_forward_kernel,
        out_shape=(
            jax.ShapeDtypeStruct((1, output_size), jnp.float32),
            jax.ShapeDtypeStruct((1, hidden_size), jnp.float32),
        ),
    )(
        x.astype(mm_dtype),
        h0,
        prepared["w_ih_t"],
        prepared["w_hh_t"],
        prepared["b_ih"],
        prepared["b_hh"],
        prepared["w_lin_t"],
        prepared["b_lin"],
    )
    return log_probs, hn.reshape(1, 1, hidden_size)


def rnn_forward_ref(x, hidden, params):
    """Pure-JAX f32 reference (PyTorch semantics) for correctness checks."""
    hp = jax.lax.Precision.HIGHEST
    h = hidden[0].astype(jnp.float32)
    x = x.astype(jnp.float32)
    for t in range(x.shape[0]):
        pre = (jnp.dot(x[t:t + 1], params["w_ih"].T, precision=hp) + params["b_ih"]
               + jnp.dot(h, params["w_hh"].T, precision=hp) + params["b_hh"])
        h = jnp.tanh(pre)
    logits = jnp.dot(h, params["w_lin"].T, precision=hp) + params["b_lin"]
    return jax.nn.log_softmax(logits, axis=-1), h.reshape(1, 1, -1)


def init_params(key, input_size, hidden_size, output_size):
    """Deterministic PyTorch-style init: U(-1/sqrt(fan), 1/sqrt(fan))."""
    ks = jax.random.split(key, 6)
    k_rnn = 1.0 / jnp.sqrt(hidden_size)
    k_lin = 1.0 / jnp.sqrt(hidden_size)
    u = lambda k, shape, b: jax.random.uniform(k, shape, jnp.float32, -b, b)
    return {
        "w_ih": u(ks[0], (hidden_size, input_size), k_rnn),
        "w_hh": u(ks[1], (hidden_size, hidden_size), k_rnn),
        "b_ih": u(ks[2], (hidden_size,), k_rnn),
        "b_hh": u(ks[3], (hidden_size,), k_rnn),
        "w_lin": u(ks[4], (output_size, hidden_size), k_lin),
        "b_lin": u(ks[5], (output_size,), k_lin),
    }


if __name__ == "__main__":
    input_size, hidden_size, output_size, num_layers = 32, 64, 16, 1
    seq_len = 8

    key = jax.random.PRNGKey(0)
    k_param, k_x = jax.random.split(key)
    params = init_params(k_param, input_size, hidden_size, output_size)

    x = jax.random.normal(k_x, (seq_len, input_size), jnp.float32)
    hidden = jnp.zeros((num_layers, 1, hidden_size), jnp.float32)  # inithidden()

    # Pure-JAX reference.
    logp_ref, hn_ref = rnn_forward_ref(x, hidden, params)

    fwd = jax.jit(rnn_forward)

    # --- f32 path: exact-semantics check ---
    prep_f32 = prepare_params(params, jnp.float32)
    log_probs, hn = fwd(x, hidden, prep_f32)
    jax.block_until_ready((log_probs, hn))

    assert log_probs.shape == (1, output_size)
    assert hn.shape == (num_layers, 1, hidden_size)
    assert jnp.allclose(jnp.sum(jnp.exp(log_probs), axis=-1), 1.0, atol=1e-5)
    assert jnp.allclose(log_probs, logp_ref, atol=1e-3, rtol=1e-3)
    assert jnp.allclose(hn, hn_ref, atol=1e-3, rtol=1e-3)

    # --- bf16-weight path (f32 accumulation): looser tolerance vs f32 reference ---
    prep_bf16 = prepare_params(params, jnp.bfloat16)
    log_probs16, hn16 = fwd(x, hidden, prep_bf16)
    jax.block_until_ready((log_probs16, hn16))

    assert log_probs16.shape == (1, output_size)
    assert jnp.allclose(jnp.sum(jnp.exp(log_probs16), axis=-1), 1.0, atol=1e-3)
    assert jnp.allclose(log_probs16, logp_ref, atol=0.25)

    print("KERNEL_OK")
</pallas_src>

<mosaic_0001>
module attributes {stable_mosaic.version = 11 : i64} {
  func.func @_rnn_forward_kernel(%arg0: memref<8x32xf32, #tpu.memory_space<vmem>>, %arg1: memref<1x64xf32, #tpu.memory_space<vmem>>, %arg2: memref<32x64xf32, #tpu.memory_space<vmem>>, %arg3: memref<64x64xf32, #tpu.memory_space<vmem>>, %arg4: memref<1x64xf32, #tpu.memory_space<vmem>>, %arg5: memref<1x64xf32, #tpu.memory_space<vmem>>, %arg6: memref<64x16xf32, #tpu.memory_space<vmem>>, %arg7: memref<1x16xf32, #tpu.memory_space<vmem>>, %arg8: memref<1x16xf32, #tpu.memory_space<vmem>>, %arg9: memref<1x64xf32, #tpu.memory_space<vmem>>) attributes {dimension_semantics = [], scalar_prefetch = 0 : i64, scratch_operands = 0 : i64, tpu.core_type = #tpu.core_type<tc>} {
    %c0 = arith.constant 0 : index
    %c0_0 = arith.constant 0 : index
    %0 = vector.load %arg0[%c0, %c0_0] : memref<8x32xf32, #tpu.memory_space<vmem>>, vector<8x32xf32>
    %c0_1 = arith.constant 0 : index
    %c0_2 = arith.constant 0 : index
    %1 = vector.load %arg2[%c0_1, %c0_2] : memref<32x64xf32, #tpu.memory_space<vmem>>, vector<32x64xf32>
    %cst = arith.constant dense<0.000000e+00> : vector<8x64xf32>
    %2 = tpu.matmul %0, %1, %cst {dimension_numbers = #tpu.dot_dimension_numbers<[1], [0], [0], [1], [0, 0, 1, 1], [], []>} : vector<8x32xf32>, vector<32x64xf32>, vector<8x64xf32> -> vector<8x64xf32>
    %c0_3 = arith.constant 0 : index
    %c0_4 = arith.constant 0 : index
    %3 = vector.load %arg4[%c0_3, %c0_4] : memref<1x64xf32, #tpu.memory_space<vmem>>, vector<1x64xf32>
    %4 = vector.broadcast %3 : vector<1x64xf32> to vector<8x64xf32>
    %5 = arith.addf %2, %4 : vector<8x64xf32>
    %c0_5 = arith.constant 0 : index
    %c0_6 = arith.constant 0 : index
    %6 = vector.load %arg3[%c0_5, %c0_6] : memref<64x64xf32, #tpu.memory_space<vmem>>, vector<64x64xf32>
    %c0_7 = arith.constant 0 : index
    %c0_8 = arith.constant 0 : index
    %7 = vector.load %arg5[%c0_7, %c0_8] : memref<1x64xf32, #tpu.memory_space<vmem>>, vector<1x64xf32>
    %c0_9 = arith.constant 0 : index
    %c0_10 = arith.constant 0 : index
    %8 = vector.load %arg1[%c0_9, %c0_10] : memref<1x64xf32, #tpu.memory_space<vmem>>, vector<1x64xf32>
    %9 = vector.extract_strided_slice %5 {offsets = [0, 0], sizes = [1, 64], strides = [1, 1]} : vector<8x64xf32> to vector<1x64xf32>
    %cst_11 = arith.constant dense<0.000000e+00> : vector<1x64xf32>
    %10 = tpu.matmul %8, %6, %cst_11 {dimension_numbers = #tpu.dot_dimension_numbers<[1], [0], [0], [1], [0, 0, 1, 1], [], []>} : vector<1x64xf32>, vector<64x64xf32>, vector<1x64xf32> -> vector<1x64xf32>
    %11 = arith.addf %9, %10 : vector<1x64xf32>
    %12 = arith.addf %11, %7 : vector<1x64xf32>
    %13 = math.tanh %12 : vector<1x64xf32>
    %14 = vector.extract_strided_slice %5 {offsets = [1, 0], sizes = [1, 64], strides = [1, 1]} : vector<8x64xf32> to vector<1x64xf32>
    %cst_12 = arith.constant dense<0.000000e+00> : vector<1x64xf32>
    %15 = tpu.matmul %13, %6, %cst_12 {dimension_numbers = #tpu.dot_dimension_numbers<[1], [0], [0], [1], [0, 0, 1, 1], [], []>} : vector<1x64xf32>, vector<64x64xf32>, vector<1x64xf32> -> vector<1x64xf32>
    %16 = arith.addf %14, %15 : vector<1x64xf32>
    %17 = arith.addf %16, %7 : vector<1x64xf32>
    %18 = math.tanh %17 : vector<1x64xf32>
    %19 = vector.extract_strided_slice %5 {offsets = [2, 0], sizes = [1, 64], strides = [1, 1]} : vector<8x64xf32> to vector<1x64xf32>
    %cst_13 = arith.constant dense<0.000000e+00> : vector<1x64xf32>
    %20 = tpu.matmul %18, %6, %cst_13 {dimension_numbers = #tpu.dot_dimension_numbers<[1], [0], [0], [1], [0, 0, 1, 1], [], []>} : vector<1x64xf32>, vector<64x64xf32>, vector<1x64xf32> -> vector<1x64xf32>
    %21 = arith.addf %19, %20 : vector<1x64xf32>
    %22 = arith.addf %21, %7 : vector<1x64xf32>
    %23 = math.tanh %22 : vector<1x64xf32>
    %24 = vector.extract_strided_slice %5 {offsets = [3, 0], sizes = [1, 64], strides = [1, 1]} : vector<8x64xf32> to vector<1x64xf32>
    %cst_14 = arith.constant dense<0.000000e+00> : vector<1x64xf32>
    %25 = tpu.matmul %23, %6, %cst_14 {dimension_numbers = #tpu.dot_dimension_numbers<[1], [0], [0], [1], [0, 0, 1, 1], [], []>} : vector<1x64xf32>, vector<64x64xf32>, vector<1x64xf32> -> vector<1x64xf32>
    %26 = arith.addf %24, %25 : vector<1x64xf32>
    %27 = arith.addf %26, %7 : vector<1x64xf32>
    %28 = math.tanh %27 : vector<1x64xf32>
    %29 = vector.extract_strided_slice %5 {offsets = [4, 0], sizes = [1, 64], strides = [1, 1]} : vector<8x64xf32> to vector<1x64xf32>
    %cst_15 = arith.constant dense<0.000000e+00> : vector<1x64xf32>
    %30 = tpu.matmul %28, %6, %cst_15 {dimension_numbers = #tpu.dot_dimension_numbers<[1], [0], [0], [1], [0, 0, 1, 1], [], []>} : vector<1x64xf32>, vector<64x64xf32>, vector<1x64xf32> -> vector<1x64xf32>
    %31 = arith.addf %29, %30 : vector<1x64xf32>
    %32 = arith.addf %31, %7 : vector<1x64xf32>
    %33 = math.tanh %32 : vector<1x64xf32>
    %34 = vector.extract_strided_slice %5 {offsets = [5, 0], sizes = [1, 64], strides = [1, 1]} : vector<8x64xf32> to vector<1x64xf32>
    %cst_16 = arith.constant dense<0.000000e+00> : vector<1x64xf32>
    %35 = tpu.matmul %33, %6, %cst_16 {dimension_numbers = #tpu.dot_dimension_numbers<[1], [0], [0], [1], [0, 0, 1, 1], [], []>} : vector<1x64xf32>, vector<64x64xf32>, vector<1x64xf32> -> vector<1x64xf32>
    %36 = arith.addf %34, %35 : vector<1x64xf32>
    %37 = arith.addf %36, %7 : vector<1x64xf32>
    %38 = math.tanh %37 : vector<1x64xf32>
    %39 = vector.extract_strided_slice %5 {offsets = [6, 0], sizes = [1, 64], strides = [1, 1]} : vector<8x64xf32> to vector<1x64xf32>
    %cst_17 = arith.constant dense<0.000000e+00> : vector<1x64xf32>
    %40 = tpu.matmul %38, %6, %cst_17 {dimension_numbers = #tpu.dot_dimension_numbers<[1], [0], [0], [1], [0, 0, 1, 1], [], []>} : vector<1x64xf32>, vector<64x64xf32>, vector<1x64xf32> -> vector<1x64xf32>
    %41 = arith.addf %39, %40 : vector<1x64xf32>
    %42 = arith.addf %41, %7 : vector<1x64xf32>
    %43 = math.tanh %42 : vector<1x64xf32>
    %44 = vector.extract_strided_slice %5 {offsets = [7, 0], sizes = [1, 64], strides = [1, 1]} : vector<8x64xf32> to vector<1x64xf32>
    %cst_18 = arith.constant dense<0.000000e+00> : vector<1x64xf32>
    %45 = tpu.matmul %43, %6, %cst_18 {dimension_numbers = #tpu.dot_dimension_numbers<[1], [0], [0], [1], [0, 0, 1, 1], [], []>} : vector<1x64xf32>, vector<64x64xf32>, vector<1x64xf32> -> vector<1x64xf32>
    %46 = arith.addf %44, %45 : vector<1x64xf32>
    %47 = arith.addf %46, %7 : vector<1x64xf32>
    %48 = math.tanh %47 : vector<1x64xf32>
    %c0_19 = arith.constant 0 : index
    %c0_20 = arith.constant 0 : index
    %49 = vector.load %arg9[%c0_19, %c0_20] : memref<1x64xf32, #tpu.memory_space<vmem>>, vector<1x64xf32>
    tpu.vector_store %arg9[%c0_19, %c0_20], %48 {strides = array<i32>} : memref<1x64xf32, #tpu.memory_space<vmem>>, vector<1x64xf32>,
    %c0_21 = arith.constant 0 : index
    %c0_22 = arith.constant 0 : index
    %50 = vector.load %arg6[%c0_21, %c0_22] : memref<64x16xf32, #tpu.memory_space<vmem>>, vector<64x16xf32>
    %cst_23 = arith.constant dense<0.000000e+00> : vector<1x16xf32>
    %51 = tpu.matmul %48, %50, %cst_23 {dimension_numbers = #tpu.dot_dimension_numbers<[1], [0], [0], [1], [0, 0, 1, 1], [], []>} : vector<1x64xf32>, vector<64x16xf32>, vector<1x16xf32> -> vector<1x16xf32>
    %c0_24 = arith.constant 0 : index
    %c0_25 = arith.constant 0 : index
    %52 = vector.load %arg7[%c0_24, %c0_25] : memref<1x16xf32, #tpu.memory_space<vmem>>, vector<1x16xf32>
    %53 = arith.addf %51, %52 : vector<1x16xf32>
    %cst_26 = arith.constant dense<0xFF800000> : vector<1xf32>
    %54 = vector.multi_reduction <maximumf>, %53, %cst_26 [1] : vector<1x16xf32> to vector<1xf32>
    %55 = vector.shape_cast %54 : vector<1xf32> to vector<1x1xf32>
    %56 = vector.broadcast %55 : vector<1x1xf32> to vector<1x16xf32>
    %57 = arith.subf %53, %56 : vector<1x16xf32>
    %58 = math.exp %57 : vector<1x16xf32>
    %cst_27 = arith.constant dense<0.000000e+00> : vector<1xf32>
    %59 = vector.multi_reduction <add>, %58, %cst_27 [1] : vector<1x16xf32> to vector<1xf32>
    %60 = vector.shape_cast %59 : vector<1xf32> to vector<1x1xf32>
    %61 = math.log %60 : vector<1x1xf32>
    %62 = vector.broadcast %61 : vector<1x1xf32> to vector<1x16xf32>
    %63 = arith.subf %57, %62 : vector<1x16xf32>
    %c0_28 = arith.constant 0 : index
    %c0_29 = arith.constant 0 : index
    %64 = vector.load %arg8[%c0_28, %c0_29] : memref<1x16xf32, #tpu.memory_space<vmem>>, vector<1x16xf32>
    tpu.vector_store %arg8[%c0_28, %c0_29], %63 {strides = array<i32>} : memref<1x16xf32, #tpu.memory_space<vmem>>, vector<1x16xf32>,
    return
  }
}

</mosaic_0001>

<bundles_post_ra>
// kernel: rnn_forward.1
= control target key start
LH: loop header
LB: loop body
LE: loop exit
PB: predicated region body
PF: predicated region fallthrough
CT: control target
= control target key end

     0   :  { %15 = vsyncpa [#allocation3], 0  ;;  %s739_s0 = inlined_call_operand.vmem [shape: f32[8,32], index: 0, kind: input, shape index: {}]   ;;  %s740_s1 = inlined_call_operand.vmem [shape: f32[1,64], index: 1, kind: input, shape index: {}]   ;;  %s741_s2 = inlined_call_operand.hbm [shape: f32[32,64], index: 2, kind: input, shape index: {}]   ;;  %s742_s3 = inlined_call_operand.vmem [shape: f32[64,64], index: 3, kind: input, shape index: {}]   ;;  %s743_s4 = inlined_call_operand.vmem [shape: f32[1,64], index: 4, kind: input, shape index: {}]   ;;  %s744_s5 = inlined_call_operand.vmem [shape: f32[1,64], index: 5, kind: input, shape index: {}]   ;;  %s745_s6 = inlined_call_operand.vmem [shape: f32[64,16], index: 6, kind: input, shape index: {}]   ;;  %s746_s7 = inlined_call_operand.vmem [shape: f32[1,16], index: 7, kind: input, shape index: {}]   ;;  %s747_s8 = inlined_call_operand.hbm [shape: f32[1,16], index: 8, kind: output, shape index: {0}]   ;;  %s748_s9 = inlined_call_operand.hbm [shape: f32[1,64], index: 9, kind: output, shape index: {1}]  }
   0x1   :  { %16 = vsyncpa [#allocation4], 0 }
   0x2   :  { %17 = vsyncpa [#allocation7], 0  ;;  %s26_s11 = sshll.u32 %s741_s2, 4  ;;  %s528_s12 = smov [#allocation2]   ;;  %s27_s11 = int_to_ptr.hbm [resolvable:$true] %s26_s11 }
   0x3   :  { %s28_s13 = sshll.u32 %s528_s12, 4  ;;  %s529_s14 = smov 128   ;;  %s29_s13 = int_to_ptr.vmem [resolvable:$true] %s28_s13 }
   0x4   :  { %s530_s15 = smov 8  }
   0x5   :  { %34 = dma.hbm_to_vmem [thread:$0]  %s27_s11, 512, %s29_s13, [#allocation3], %s529_s14, %s529_s14, %s530_s15  }
   0x6   :  { %522 = dma.done.wait [#allocation3], 512  }
   0x7   :  { %523 = vsyncadd [#allocation3], 4294966784  ;;  %v589_v0 = vld [vmem:[%s742_s3 + $0x38] sm:$0xff]  ;;  %v594_v1 = vld [vmem:[%s742_s3 + $0x30] sm:$0xff]  ;;  %vm58_vm0 = vcmask 261120   ;;  %vm92_vm1 = vcmask 523264  }
   0x8   :  { %104 = vmatpush.msra.mxu1 %v589_v0  ;;  %v53_v2 = vld [vmem:[#allocation2 + $0x18] sm:$0xff]  ;;  %v52_v3 = vld [vmem:[#allocation2 + $0x10] sm:$0xff]  ;;  %130 = vmatpush.msra.mxu2 %v589_v0  ;;  %v601_v4 = vld [vmem:[%s742_s3 + $0x28] sm:$0xff]  ;;  %vm331_vm2 = vcmask 523271   ;;  %vm366_vm3 = vcmask 122880   ;;  %s387_s15 = sshll.u32 %s747_s8, 4  ;;  %s388_s15 = int_to_ptr.hbm [resolvable:$true] %s387_s15 }
   0x9   :  { %74 = vmatpush.msra.mxu0 %v53_v2  ;;  %163 = vmatpush.msra.mxu3 %v589_v0  ;;  %v51_v5 = vld [vmem:[#allocation2 + $0x8] sm:$0xff]  ;;  %v609_v6 = vld [vmem:[%s742_s3 + $0x20] sm:$0xff]  ;;  %v617_v8 = vld [vmem:[%s742_s3 + $0x18] sm:$0xff] }
   0xa   :  { %105 = vmatpush.msra.mxu1 %v594_v1  ;;  %131 = vmatpush.msra.mxu2 %v594_v1  ;;  %v50_v7 = vld [vmem:[#allocation2] sm:$0xff]  ;;  %v84_v10 = vld [vmem:[%s742_s3 + $0x10] sm:$0xff]  ;;  %v83_v11 = vld [vmem:[%s742_s3 + $0x8] sm:$0xff] }
   0xb   :  { %75 = vmatpush.msra.mxu0 %v52_v3  ;;  %164 = vmatpush.msra.mxu3 %v594_v1  ;;  %v49_v9 = vld [vmem:[%s739_s0] sm:$0xff]  ;;  %v340_v59 = vld [vmem:[%s745_s6 + $0x38] sm:$0xff]  ;;  %v339_v60 = vld [vmem:[%s745_s6 + $0x30] sm:$0xff] }
   0xc   :  { %106 = vmatpush.msra.mxu1 %v601_v4  ;;  %132 = vmatpush.msra.mxu2 %v601_v4  ;;  %v82_v12 = vld [vmem:[%s742_s3] sm:$0xff]  ;;  %v338_v61 = vld [vmem:[%s745_s6 + $0x28] sm:$0xff]  ;;  %v336_v63 = vld [vmem:[%s745_s6 + $0x18] sm:$0xff] }
   0xd   :  { %76 = vmatpush.msra.mxu0 %v51_v5  ;;  %165 = vmatpush.msra.mxu3 %v601_v4  ;;  %v91_v13 = vld [vmem:[%s740_s1] sm:$0x1]  ;;  %s532_s1 = smov [#allocation5]  }
   0xe   :  { %107 = vmatpush.msra.mxu1 %v609_v6  ;;  %133 = vmatpush.msra.mxu2 %v609_v6  ;;  %v428_v14 = vld [vmem:[%s743_s4] ss:$0 sm:$0xff]  ;;  %s385_s3 = sshll.u32 %s532_s1, 4  ;;  %s386_s3 = int_to_ptr.vmem [resolvable:$true] %s385_s3 }
   0xf   :  { %77 = vmatpush.msra.mxu0 %v50_v7  ;;  %166 = vmatpush.msra.mxu3 %v609_v6  ;;  %v90_v17 = vld [vmem:[%s744_s5] sm:$0x1] }
  0x10   :  { %108 = vmatpush.msra.mxu1 %v617_v8  ;;  %413 = vmatmul.msk.f32.vlgmr.msra.gmra.mxu0 %vm58_vm0, %v49_v9  ;;  %v680_v23 = vld [vmem:[%s744_s5] ss:$0 sm:$0xff] }
  0x11   :  { %134 = vmatpush.msra.mxu2 %v617_v8  ;;  %167 = vmatpush.msra.mxu3 %v617_v8  ;;  %v337_v62 = vld [vmem:[%s745_s6 + $0x20] sm:$0xff] }
  0x12   :  { %109 = vmatpush.msra.mxu1 %v84_v10  ;;  %193 = vmatpush.msrb.mxu0 %v589_v0  ;;  %v333_v2 = vld [vmem:[%s745_s6] sm:$0xff] }
  0x13   :  { %135 = vmatpush.msra.mxu2 %v84_v10  ;;  %168 = vmatpush.msra.mxu3 %v84_v10  ;;  %v341_v9 = vld [vmem:[%s746_s7] sm:$0x1]  ;;  %s398_s7 = sshll.u32 %s748_s9, 4  ;;  %s399_s7 = int_to_ptr.hbm [resolvable:$true] %s398_s7 }
  0x14   :  { %110 = vmatpush.msra.mxu1 %v83_v11  ;;  %194 = vmatpush.msrb.mxu0 %v594_v1 }
  0x15   :  { %136 = vmatpush.msra.mxu2 %v83_v11  ;;  %169 = vmatpush.msra.mxu3 %v83_v11 }
  0x16   :  { %111 = vmatpush.msra.mxu1 %v82_v12  ;;  %195 = vmatpush.msrb.mxu0 %v601_v4 }
  0x17   :  { %414 = vmatmul.msk.f32.vlgmr.msra.gmra.mxu1 %vm92_vm1, %v91_v13  ;;  %137 = vmatpush.msra.mxu2 %v82_v12 }
  0x18   :  { %170 = vmatpush.msra.mxu3 %v82_v12  ;;  %196 = vmatpush.msrb.mxu0 %v609_v6 }
  0x19   :  { %223 = vmatpush.msrb.mxu1 %v589_v0  ;;  %253 = vmatpush.msrb.mxu2 %v589_v0 }
  0x1a   :  { %197 = vmatpush.msrb.mxu0 %v617_v8  ;;  %283 = vmatpush.msrb.mxu3 %v589_v0 }
  0x1b   :  { %224 = vmatpush.msrb.mxu1 %v594_v1  ;;  %254 = vmatpush.msrb.mxu2 %v594_v1 }
  0x1c   :  { %198 = vmatpush.msrb.mxu0 %v84_v10  ;;  %284 = vmatpush.msrb.mxu3 %v594_v1 }
  0x1d   :  { %225 = vmatpush.msrb.mxu1 %v601_v4  ;;  %255 = vmatpush.msrb.mxu2 %v601_v4 }
  0x1e   :  { %199 = vmatpush.msrb.mxu0 %v83_v11  ;;  %285 = vmatpush.msrb.mxu3 %v601_v4 }
  0x1f   :  { %226 = vmatpush.msrb.mxu1 %v609_v6  ;;  %256 = vmatpush.msrb.mxu2 %v609_v6 }
  0x20   :  { %200 = vmatpush.msrb.mxu0 %v82_v12  ;;  %286 = vmatpush.msrb.mxu3 %v609_v6 }
  0x21   :  { %227 = vmatpush.msrb.mxu1 %v617_v8  ;;  %257 = vmatpush.msrb.mxu2 %v617_v8 }
  0x22   :  { %287 = vmatpush.msrb.mxu3 %v617_v8  ;;  %313 = vmatpush.msra.mxu0 %v589_v0  ;;  %v335_v0 = vld [vmem:[%s745_s6 + $0x10] sm:$0xff] }
  0x23   :  { %228 = vmatpush.msrb.mxu1 %v84_v10  ;;  %258 = vmatpush.msrb.mxu2 %v84_v10 }
  0x24   :  { %288 = vmatpush.msrb.mxu3 %v84_v10  ;;  %314 = vmatpush.msra.mxu0 %v594_v1  ;;  %v334_v1 = vld [vmem:[%s745_s6 + $0x8] sm:$0xff]  ;;  %s531_s6 = smov [#allocation6]  }
  0x25   :  { %229 = vmatpush.msrb.mxu1 %v83_v11  ;;  %259 = vmatpush.msrb.mxu2 %v83_v11  ;;  %s396_s10 = sshll.u32 %s531_s6, 4  ;;  %s397_s10 = int_to_ptr.vmem [resolvable:$true] %s396_s10 }
  0x26   :  { %289 = vmatpush.msrb.mxu3 %v83_v11  ;;  %315 = vmatpush.msra.mxu0 %v601_v4 }
  0x27   :  { %230 = vmatpush.msrb.mxu1 %v82_v12  ;;  %260 = vmatpush.msrb.mxu2 %v82_v12 }
  0x28   :  { %290 = vmatpush.msrb.mxu3 %v82_v12  ;;  %316 = vmatpush.msra.mxu0 %v609_v6 }
  0x29   :  { %354 = vmatpush.msra.mxu1 %v340_v59 }
  0x2a   :  { %317 = vmatpush.msra.mxu0 %v617_v8 }
  0x2b   :  { %355 = vmatpush.msra.mxu1 %v339_v60 }
  0x2c   :  { %318 = vmatpush.msra.mxu0 %v84_v10 }
  0x2d   :  { %356 = vmatpush.msra.mxu1 %v338_v61 }
  0x2e   :  { %319 = vmatpush.msra.mxu0 %v83_v11 }
  0x2f   :  { %357 = vmatpush.msra.mxu1 %v337_v62 }
  0x30   :  { %320 = vmatpush.msra.mxu0 %v82_v12 }
  0x31   :  { %358 = vmatpush.msra.mxu1 %v336_v63 }
  0x33   :  { %359 = vmatpush.msra.mxu1 %v335_v0 }
  0x35   :  { %360 = vmatpush.msra.mxu1 %v334_v1 }
  0x37   :  { %361 = vmatpush.msra.mxu1 %v333_v2 }
  0x8d   :  { %v79_v15 = vpop.f32.mrf.mxu0 }
  0x8e   :  { %v670_v16 = vadd.f32 %v428_v14, %v79_v15 }
  0x94   :  { %v113_v18 = vpop.f32.mrf.mxu1 }
  0x95   :  { %v116_v19 = vadd.f32 %v113_v18, %v670_v16 }
  0x97   :  { %v117_v20 = vadd.f32 %v116_v19, %v90_v17 }
  0x99   :  { %430 = vtanh.f32 %v117_v20 }
  0x9f   :  { %v431_v21 = vpop.eup %430 }
  0xa0   :  { %415 = vmatmul.msk.f32.vlgmr.msra.gmra.mxu2 %vm92_vm1, %v431_v21 }
 0x123   :  { %v139_v22 = vpop.f32.mrf.mxu2 }
 0x124   :  { %v143_v24 = vrot.slane %v139_v22, 7 }
 0x126   :  { %v145_v25 = vadd.f32 %v143_v24, %v670_v16 }
 0x128   :  { %v149_v26 = vadd.f32 %v680_v23, %v145_v25 }
 0x12a   :  { %432 = vtanh.f32 %v149_v26 }
 0x130   :  { %v433_v27 = vpop.eup %432 }
 0x131   :  { %v152_v28 = vrot.slane %v433_v27, 1 }
 0x133   :  { %416 = vmatmul.msk.f32.vlgmr.msra.gmra.mxu3 %vm92_vm1, %v152_v28 }
 0x1b6   :  { %v172_v29 = vpop.f32.mrf.mxu3 }
 0x1b7   :  { %v176_v30 = vrot.slane %v172_v29, 6 }
 0x1b9   :  { %v178_v31 = vadd.f32 %v176_v30, %v670_v16 }
 0x1bb   :  { %v179_v32 = vadd.f32 %v680_v23, %v178_v31 }
 0x1bd   :  { %434 = vtanh.f32 %v179_v32 }
 0x1c3   :  { %v435_v33 = vpop.eup %434 }
 0x1c4   :  { %v182_v34 = vrot.slane %v435_v33, 2 }
 0x1c6   :  { %417 = vmatmul.msk.f32.vlgmr.msrb.gmra.mxu0 %vm92_vm1, %v182_v34 }
 0x243   :  { %v202_v35 = vpop.f32.mrf.mxu0 }
 0x244   :  { %v206_v36 = vrot.slane %v202_v35, 5 }
 0x246   :  { %v208_v37 = vadd.f32 %v206_v36, %v670_v16 }
 0x248   :  { %v209_v38 = vadd.f32 %v680_v23, %v208_v37 }
 0x24a   :  { %436 = vtanh.f32 %v209_v38 }
 0x250   :  { %v437_v39 = vpop.eup %436 }
 0x251   :  { %v212_v40 = vrot.slane %v437_v39, 3 }
 0x253   :  { %418 = vmatmul.msk.f32.vlgmr.msrb.gmra.mxu1 %vm92_vm1, %v212_v40 }
 0x2d0   :  { %v232_v41 = vpop.f32.mrf.mxu1 }
 0x2d1   :  { %v236_v42 = vrot.slane %v232_v41, 4 }
 0x2d3   :  { %v238_v43 = vadd.f32 %v236_v42, %v670_v16 }
 0x2d5   :  { %v239_v44 = vadd.f32 %v680_v23, %v238_v43 }
 0x2d7   :  { %438 = vtanh.f32 %v239_v44 }
 0x2dd   :  { %v439_v45 = vpop.eup %438 }
 0x2de   :  { %v242_v46 = vrot.slane %v439_v45, 4 }
 0x2e0   :  { %419 = vmatmul.msk.f32.vlgmr.msrb.gmra.mxu2 %vm92_vm1, %v242_v46 }
 0x363   :  { %v262_v47 = vpop.f32.mrf.mxu2 }
 0x364   :  { %v266_v48 = vrot.slane %v262_v47, 3 }
 0x366   :  { %v268_v49 = vadd.f32 %v266_v48, %v670_v16 }
 0x368   :  { %v269_v50 = vadd.f32 %v680_v23, %v268_v49 }
 0x36a   :  { %440 = vtanh.f32 %v269_v50 }
 0x370   :  { %v441_v51 = vpop.eup %440 }
 0x371   :  { %v272_v52 = vrot.slane %v441_v51, 5 }
 0x373   :  { %420 = vmatmul.msk.f32.vlgmr.msrb.gmra.mxu3 %vm92_vm1, %v272_v52 }
 0x3f6   :  { %v292_v53 = vpop.f32.mrf.mxu3 }
 0x3f7   :  { %v296_v54 = vrot.slane %v292_v53, 2 }
 0x3f9   :  { %v298_v55 = vadd.f32 %v296_v54, %v670_v16 }
 0x3fb   :  { %v299_v56 = vadd.f32 %v680_v23, %v298_v55 }
 0x3fd   :  { %442 = vtanh.f32 %v299_v56 }
 0x403   :  { %v443_v57 = vpop.eup %442 }
 0x404   :  { %v302_v58 = vrot.slane %v443_v57, 6 }
 0x406   :  { %421 = vmatmul.msk.f32.vlgmr.msra.gmra.mxu0 %vm92_vm1, %v302_v58 }
 0x483   :  { %v322_v3 = vpop.f32.mrf.mxu0 }
 0x484   :  { %v326_v4 = vrot.slane %v322_v3, 1 }
 0x486   :  { %v328_v5 = vadd.f32 %v326_v4, %v670_v16 }
 0x488   :  { %v329_v6 = vadd.f32 %v680_v23, %v328_v5 }
 0x48a   :  { %444 = vtanh.f32 %v329_v6 }
 0x490   :  { %v445_v7 = vpop.eup %444 }
 0x491   :  { %v343_v8 = vrot.slane %v445_v7, 7  ;;  %332 = vst.msk [vmem:[#allocation6 - $0x7] sm:$0x80] %vm331_vm2, %v445_v7 }
 0x492   :  { %401 = dma.vmem_to_hbm [thread:$0]  %s397_s10, 16, %s399_s7, [#allocation7]  }
 0x493   :  { %422 = vmatmul.msk.f32.vlgmr.msra.gmra.mxu1 %vm92_vm1, %v343_v8 }
 0x510   :  { %v363_v10 = vpop.f32.mrf.mxu1 }
 0x511   :  { %v364_v11 = vadd.f32 %v363_v10, %v341_v9 }
 0x513   :  { %v367_v12 = vsel %vm366_vm3, %v364_v11, -inf }
 0x514   :  { %368 = vmax.xlane.f32.xlu0 %v367_v12 }
 0x587   :  { %v369_v13 = vpop.xlane.xlu0 %368 }
 0x588   :  { %v370_v14 = vsub.f32 %v364_v11, %v369_v13 }
 0x58a   :  { %v371_v15 = vmul.f32 1.442695, %v370_v14 }
 0x58c   :  { %446 = vpow2.f32 %v371_v15 }
 0x592   :  { %v447_v16 = vpop.eup %446 }
 0x593   :  { %v373_v17 = vsel %vm366_vm3, %v447_v16, 0.0 }
 0x594   :  { %374 = vadd.xlane.f32.xlu0 %v373_v17 }
 0x607   :  { %v375_v18 = vpop.xlane.xlu0 %374 }
 0x608   :  { %448 = vlog2.f32 %v375_v18 }
 0x60e   :  { %v449_v19 = vpop.eup %448 }
 0x60f   :  { %v377_v20 = vmul.f32 0.6931472, %v449_v19 }
 0x611   :  { %v378_v21 = vsub.f32 %v370_v14, %v377_v20 }
 0x613   :  { %379 = vst.msk [vmem:[#allocation5] sm:$0x1] %vm366_vm3, %v378_v21 }
 0x614   :  { %390 = dma.vmem_to_hbm [thread:$0]  %s386_s3, 16, %s388_s15, [#allocation4]  }
 0x615   :  { %524 = dma.done.wait [#allocation4], 16  }
 0x616   :  { %525 = vsyncadd [#allocation4], 4294967280 }
 0x617   :  { %526 = dma.done.wait [#allocation7], 16  }
 0x618   :  { %527 = vsyncadd [#allocation7], 4294967280 }
 0x619   :  { %410 = vsyncpa [#allocation3], 1 }
 0x61a   :  { %411 = vsyncpa [#allocation4], 1 }
 0x61b   :  { %412 = vsyncpa [#allocation7], 1 }

</bundles_post_ra>
